<compile_context>
chip_gen: v7x
topology: tpu7x:2x2x1
jax: 0.10.0
libtpu: 0.0.40
codegen_flags: <defaults>
</compile_context>

<pallas_src>
import jax
import jax.numpy as jnp
from jax.experimental import pallas as pl
from jax.experimental.pallas import tpu as pltpu

EPS = 1e-5


def face_attention_kernel(face_ref, fc_ref, img_ref, lab_ref, mask_ref,
                          w1f_ref, w1c_ref, w1i_ref, w1l_ref, b1_ref, w2_ref,
                          alpha_ref, ctx_ref):
    # face_ref: (TB, S, Fd)   fc_ref: (TB, S, Dfc)   img_ref: (TB, S, Dimg)
    # lab_ref:  (TB, Dlab)    mask_ref: (TB, S)
    # w1*_ref:  (d_part, H) row-chunks of linear1.weight.T,  b1_ref: (1, H)
    # w2_ref:   (1, H)        alpha_ref: (TB, S)   ctx_ref: (TB, Fd)
    TB, S, Fd = face_ref.shape
    H = b1_ref.shape[-1]

    face = face_ref[...]                                      # (TB, S, Fd)

    # linear1 on the (virtual) concatenated input as a split matmul.
    # Flatten rows so the matmuls are plain 2-D MXU ops; S is a multiple of
    # the sublane tile here so the collapse is layout-preserving.
    x_face = face.reshape(TB * S, Fd)
    x_fc = fc_ref[...].reshape(TB * S, fc_ref.shape[-1])
    x_img = img_ref[...].reshape(TB * S, img_ref.shape[-1])

    h2 = (jnp.dot(x_face, w1f_ref[...], preferred_element_type=jnp.float32)
          + jnp.dot(x_fc, w1c_ref[...], preferred_element_type=jnp.float32)
          + jnp.dot(x_img, w1i_ref[...], preferred_element_type=jnp.float32))
    lab_h = jnp.dot(lab_ref[...], w1l_ref[...],
                    preferred_element_type=jnp.float32)        # (TB, H)

    h = jnp.tanh(h2.reshape(TB, S, H)
                 + lab_h[:, None, :]
                 + b1_ref[...][None, :, :])                    # (TB, S, H)

    # linear2 has a single output column: do it as a VPU multiply + reduce
    # instead of wasting 127/128 MXU result columns.
    e = jnp.sum(h * w2_ref[...][None, :, :], axis=-1)          # (TB, S)

    # softmax over the sequence (lane) axis, then mask + renormalize.
    m = jnp.max(e, axis=-1, keepdims=True)
    p = jnp.exp(e - m)
    alpha = p / jnp.sum(p, axis=-1, keepdims=True)
    alpha = alpha * mask_ref[...]
    alpha = alpha / (jnp.sum(alpha, axis=-1, keepdims=True) + EPS)

    alpha_ref[...] = alpha                                     # (TB, S)
    # context[b, :] = sum_s alpha[b, s] * face[b, s, :]
    ctx_ref[...] = jnp.sum(alpha[:, :, None] * face, axis=1)   # (TB, Fd)


def _pick_block_b(B, S, max_rows=4096):
    """Largest multiple-of-8 divisor of B with TB*S <= max_rows; else TB=B.

    TB=B is always a valid fallback (block equals the full array extent)."""
    best = None
    tb = 8
    while tb <= B and tb * S <= max_rows:
        if B % tb == 0:
            best = tb
        tb += 8
    return best if best is not None else B


def face_attention(fc_feat, img_feat, label_feat, face, face_mask,
                   w1, b1, w2, *, block_b=None):
    """Pallas implementation of FaceAttention.forward.

    w1: (dim2, dim1+dim2)  (PyTorch Linear weight layout)
    b1: (dim2,)
    w2: (1, dim2)
    Returns (alpha: (B, S), context: (B, d_face)).
    """
    B, S, Fd = face.shape
    d_fc = fc_feat.shape[-1]
    d_img = img_feat.shape[-1]
    d_lab = label_feat.shape[-1]
    D = Fd + d_fc + d_img + d_lab
    H = w1.shape[0]
    assert w1.shape == (H, D)

    f32 = jnp.float32
    w1t = jnp.asarray(w1, f32).T                     # (D, H)
    # Row-chunks matching the concat order: face, fc, img, label.
    w1_face = w1t[:Fd]
    w1_fc = w1t[Fd:Fd + d_fc]
    w1_img = w1t[Fd + d_fc:Fd + d_fc + d_img]
    w1_lab = w1t[Fd + d_fc + d_img:]
    b1r = jnp.asarray(b1, f32).reshape(1, H)
    w2r = jnp.asarray(w2, f32).reshape(1, H)
    mask = face_mask.astype(f32).reshape(B, S)

    TB = block_b if block_b is not None else _pick_block_b(B, S)
    assert B % TB == 0
    grid = (B // TB,)

    full = lambda b: (0, 0)  # weights stay resident across grid steps

    alpha, ctx = pl.pallas_call(
        face_attention_kernel,
        grid=grid,
        in_specs=[
            pl.BlockSpec((TB, S, Fd), lambda b: (b, 0, 0)),      # face
            pl.BlockSpec((TB, S, d_fc), lambda b: (b, 0, 0)),    # fc_feat
            pl.BlockSpec((TB, S, d_img), lambda b: (b, 0, 0)),   # img_feat
            pl.BlockSpec((TB, d_lab), lambda b: (b, 0)),         # label_feat
            pl.BlockSpec((TB, S), lambda b: (b, 0)),             # mask
            pl.BlockSpec((Fd, H), full),                         # w1_face
            pl.BlockSpec((d_fc, H), full),                       # w1_fc
            pl.BlockSpec((d_img, H), full),                      # w1_img
            pl.BlockSpec((d_lab, H), full),                      # w1_lab
            pl.BlockSpec((1, H), full),                          # b1
            pl.BlockSpec((1, H), full),                          # w2
        ],
        out_specs=[
            pl.BlockSpec((TB, S), lambda b: (b, 0)),             # alpha
            pl.BlockSpec((TB, Fd), lambda b: (b, 0)),            # context
        ],
        out_shape=[
            jax.ShapeDtypeStruct((B, S), f32),
            jax.ShapeDtypeStruct((B, Fd), f32),
        ],
        compiler_params=pltpu.CompilerParams(
            dimension_semantics=("parallel",)),
    )(face.astype(f32), fc_feat.astype(f32), img_feat.astype(f32),
      label_feat.astype(f32), mask,
      w1_face, w1_fc, w1_img, w1_lab, b1r, w2r)

    return alpha, ctx


def face_attention_ref(fc_feat, img_feat, label_feat, face, face_mask,
                       w1, b1, w2):
    """Pure-JAX reference mirroring the PyTorch forward exactly."""
    B, S, _ = face.shape
    lab = jnp.broadcast_to(label_feat[:, None, :],
                           (B, S, label_feat.shape[-1]))
    inputs = jnp.concatenate([face, fc_feat, img_feat, lab], axis=2)
    inputs = inputs.reshape(-1, inputs.shape[-1])
    o = (jnp.tanh(inputs @ w1.T + b1)) @ w2.T          # (B*S, 1)
    e = o.reshape(B, S)
    alpha = jax.nn.softmax(e, axis=1)
    alpha = alpha * face_mask.reshape(-1, S).astype(jnp.float32)
    alpha = alpha / (alpha.sum(1, keepdims=True) + EPS)
    context = jnp.einsum("bs,bsd->bd", alpha, face)
    return alpha, context


if __name__ == "__main__":
    # Small, deterministic shapes consistent with the module:
    #   dim1 = 32, dim2 = 32  ->  dim1 + dim2 = 64
    #   concatenated features: face(16) + fc(16) + img(16) + label(16) = 64
    B, S = 2, 8
    d_face = d_fc = d_img = d_label = 16
    dim1, dim2 = 32, 32
    D = dim1 + dim2  # 64
    H = dim2         # 32

    key = jax.random.PRNGKey(0)
    keys = jax.random.split(key, 8)

    # Parameters (xavier_normal for weights, uniform for bias)
    w1_std = (2.0 / (H + D)) ** 0.5
    w2_std = (2.0 / (1 + H)) ** 0.5
    w1 = w1_std * jax.random.normal(keys[0], (H, D), jnp.float32)
    w2 = w2_std * jax.random.normal(keys[1], (1, H), jnp.float32)
    b1 = jax.random.uniform(keys[2], (H,), jnp.float32,
                            minval=-1.0 / (D ** 0.5), maxval=1.0 / (D ** 0.5))

    # Inputs
    fc_feat = jax.random.normal(keys[3], (B, S, d_fc), jnp.float32)
    img_feat = jax.random.normal(keys[4], (B, S, d_img), jnp.float32)
    label_feat = jax.random.normal(keys[5], (B, d_label), jnp.float32)
    face = jax.random.normal(keys[6], (B, S, d_face), jnp.float32)
    face_mask = (jax.random.uniform(keys[7], (B, S)) > 0.3).astype(jnp.float32)

    alpha, context = face_attention(fc_feat, img_feat, label_feat, face,
                                    face_mask, w1, b1, w2)
    jax.block_until_ready((alpha, context))

    alpha_ref, context_ref = face_attention_ref(fc_feat, img_feat, label_feat,
                                                face, face_mask, w1, b1, w2)
    assert alpha.shape == (B, S) and context.shape == (B, d_face)
    assert jnp.allclose(alpha, alpha_ref, atol=1e-5, rtol=1e-4)
    assert jnp.allclose(context, context_ref, atol=1e-5, rtol=1e-4)

    print("KERNEL_OK")
</pallas_src>

<mosaic_0001>
module attributes {stable_mosaic.version = 11 : i64} {
  func.func @face_attention_kernel(%arg0: i32, %arg1: memref<2x8x16xf32, #tpu.memory_space<vmem>>, %arg2: memref<2x8x16xf32, #tpu.memory_space<vmem>>, %arg3: memref<2x8x16xf32, #tpu.memory_space<vmem>>, %arg4: memref<2x16xf32, #tpu.memory_space<vmem>>, %arg5: memref<2x8xf32, #tpu.memory_space<vmem>>, %arg6: memref<16x32xf32, #tpu.memory_space<vmem>>, %arg7: memref<16x32xf32, #tpu.memory_space<vmem>>, %arg8: memref<16x32xf32, #tpu.memory_space<vmem>>, %arg9: memref<16x32xf32, #tpu.memory_space<vmem>>, %arg10: memref<1x32xf32, #tpu.memory_space<vmem>>, %arg11: memref<1x32xf32, #tpu.memory_space<vmem>>, %arg12: memref<2x8xf32, #tpu.memory_space<vmem>>, %arg13: memref<2x16xf32, #tpu.memory_space<vmem>>) attributes {dimension_semantics = [#tpu.dimension_semantics<parallel>], iteration_bounds = array<i64: 1>, scalar_prefetch = 0 : i64, scratch_operands = 0 : i64, tpu.core_type = #tpu.core_type<tc>, window_params = [{transform_indices = @transform_0, window_bounds = array<i64: 2, 8, 16>}, {transform_indices = @transform_1, window_bounds = array<i64: 2, 8, 16>}, {transform_indices = @transform_2, window_bounds = array<i64: 2, 8, 16>}, {transform_indices = @transform_3, window_bounds = array<i64: 2, 16>}, {transform_indices = @transform_4, window_bounds = array<i64: 2, 8>}, {pipeline_mode = #tpu.pipeline_mode<synchronous>, transform_indices = @transform_5, window_bounds = array<i64: 16, 32>}, {pipeline_mode = #tpu.pipeline_mode<synchronous>, transform_indices = @transform_6, window_bounds = array<i64: 16, 32>}, {pipeline_mode = #tpu.pipeline_mode<synchronous>, transform_indices = @transform_7, window_bounds = array<i64: 16, 32>}, {pipeline_mode = #tpu.pipeline_mode<synchronous>, transform_indices = @transform_8, window_bounds = array<i64: 16, 32>}, {pipeline_mode = #tpu.pipeline_mode<synchronous>, transform_indices = @transform_9, window_bounds = array<i64: 1, 32>}, {pipeline_mode = #tpu.pipeline_mode<synchronous>, transform_indices = @transform_10, window_bounds = array<i64: 1, 32>}, {transform_indices = @transform_11, window_bounds = array<i64: 2, 8>}, {transform_indices = @transform_12, window_bounds = array<i64: 2, 16>}]} {
    %c0 = arith.constant 0 : index
    %c0_0 = arith.constant 0 : index
    %c0_1 = arith.constant 0 : index
    %0 = vector.load %arg1[%c0, %c0_0, %c0_1] : memref<2x8x16xf32, #tpu.memory_space<vmem>>, vector<2x8x16xf32>
    %1 = vector.shape_cast %0 : vector<2x8x16xf32> to vector<16x16xf32>
    %c0_2 = arith.constant 0 : index
    %c0_3 = arith.constant 0 : index
    %c0_4 = arith.constant 0 : index
    %2 = vector.load %arg2[%c0_2, %c0_3, %c0_4] : memref<2x8x16xf32, #tpu.memory_space<vmem>>, vector<2x8x16xf32>
    %3 = vector.shape_cast %2 : vector<2x8x16xf32> to vector<16x16xf32>
    %c0_5 = arith.constant 0 : index
    %c0_6 = arith.constant 0 : index
    %c0_7 = arith.constant 0 : index
    %4 = vector.load %arg3[%c0_5, %c0_6, %c0_7] : memref<2x8x16xf32, #tpu.memory_space<vmem>>, vector<2x8x16xf32>
    %5 = vector.shape_cast %4 : vector<2x8x16xf32> to vector<16x16xf32>
    %c0_8 = arith.constant 0 : index
    %c0_9 = arith.constant 0 : index
    %6 = vector.load %arg6[%c0_8, %c0_9] : memref<16x32xf32, #tpu.memory_space<vmem>>, vector<16x32xf32>
    %cst = arith.constant dense<0.000000e+00> : vector<16x32xf32>
    %7 = tpu.matmul %1, %6, %cst {dimension_numbers = #tpu.dot_dimension_numbers<[1], [0], [0], [1], [0, 0, 1, 1], [], []>} : vector<16x16xf32>, vector<16x32xf32>, vector<16x32xf32> -> vector<16x32xf32>
    %c0_10 = arith.constant 0 : index
    %c0_11 = arith.constant 0 : index
    %8 = vector.load %arg7[%c0_10, %c0_11] : memref<16x32xf32, #tpu.memory_space<vmem>>, vector<16x32xf32>
    %cst_12 = arith.constant dense<0.000000e+00> : vector<16x32xf32>
    %9 = tpu.matmul %3, %8, %cst_12 {dimension_numbers = #tpu.dot_dimension_numbers<[1], [0], [0], [1], [0, 0, 1, 1], [], []>} : vector<16x16xf32>, vector<16x32xf32>, vector<16x32xf32> -> vector<16x32xf32>
    %10 = arith.addf %7, %9 : vector<16x32xf32>
    %c0_13 = arith.constant 0 : index
    %c0_14 = arith.constant 0 : index
    %11 = vector.load %arg8[%c0_13, %c0_14] : memref<16x32xf32, #tpu.memory_space<vmem>>, vector<16x32xf32>
    %cst_15 = arith.constant dense<0.000000e+00> : vector<16x32xf32>
    %12 = tpu.matmul %5, %11, %cst_15 {dimension_numbers = #tpu.dot_dimension_numbers<[1], [0], [0], [1], [0, 0, 1, 1], [], []>} : vector<16x16xf32>, vector<16x32xf32>, vector<16x32xf32> -> vector<16x32xf32>
    %13 = arith.addf %10, %12 : vector<16x32xf32>
    %c0_16 = arith.constant 0 : index
    %c0_17 = arith.constant 0 : index
    %14 = vector.load %arg4[%c0_16, %c0_17] : memref<2x16xf32, #tpu.memory_space<vmem>>, vector<2x16xf32>
    %c0_18 = arith.constant 0 : index
    %c0_19 = arith.constant 0 : index
    %15 = vector.load %arg9[%c0_18, %c0_19] : memref<16x32xf32, #tpu.memory_space<vmem>>, vector<16x32xf32>
    %cst_20 = arith.constant dense<0.000000e+00> : vector<2x32xf32>
    %16 = tpu.matmul %14, %15, %cst_20 {dimension_numbers = #tpu.dot_dimension_numbers<[1], [0], [0], [1], [0, 0, 1, 1], [], []>} : vector<2x16xf32>, vector<16x32xf32>, vector<2x32xf32> -> vector<2x32xf32>
    %17 = vector.shape_cast %13 : vector<16x32xf32> to vector<2x8x32xf32>
    %18 = vector.shape_cast %16 : vector<2x32xf32> to vector<2x1x32xf32>
    %19 = vector.broadcast %18 : vector<2x1x32xf32> to vector<2x8x32xf32>
    %20 = arith.addf %17, %19 : vector<2x8x32xf32>
    %c0_21 = arith.constant 0 : index
    %c0_22 = arith.constant 0 : index
    %21 = vector.load %arg10[%c0_21, %c0_22] : memref<1x32xf32, #tpu.memory_space<vmem>>, vector<1x32xf32>
    %22 = vector.shape_cast %21 : vector<1x32xf32> to vector<1x1x32xf32>
    %23 = vector.broadcast %22 : vector<1x1x32xf32> to vector<2x8x32xf32>
    %24 = arith.addf %20, %23 : vector<2x8x32xf32>
    %25 = math.tanh %24 : vector<2x8x32xf32>
    %c0_23 = arith.constant 0 : index
    %c0_24 = arith.constant 0 : index
    %26 = vector.load %arg11[%c0_23, %c0_24] : memref<1x32xf32, #tpu.memory_space<vmem>>, vector<1x32xf32>
    %27 = vector.shape_cast %26 : vector<1x32xf32> to vector<1x1x32xf32>
    %28 = vector.broadcast %27 : vector<1x1x32xf32> to vector<2x8x32xf32>
    %29 = arith.mulf %25, %28 : vector<2x8x32xf32>
    %cst_25 = arith.constant dense<0.000000e+00> : vector<2x8xf32>
    %30 = vector.multi_reduction <add>, %29, %cst_25 [2] : vector<2x8x32xf32> to vector<2x8xf32>
    %cst_26 = arith.constant dense<0xFF800000> : vector<2xf32>
    %31 = vector.multi_reduction <maximumf>, %30, %cst_26 [1] : vector<2x8xf32> to vector<2xf32>
    %32 = vector.shape_cast %31 : vector<2xf32> to vector<2x1xf32>
    %33 = vector.broadcast %32 : vector<2x1xf32> to vector<2x8xf32>
    %34 = arith.subf %30, %33 : vector<2x8xf32>
    %35 = math.exp %34 : vector<2x8xf32>
    %cst_27 = arith.constant dense<0.000000e+00> : vector<2xf32>
    %36 = vector.multi_reduction <add>, %35, %cst_27 [1] : vector<2x8xf32> to vector<2xf32>
    %37 = vector.shape_cast %36 : vector<2xf32> to vector<2x1xf32>
    %38 = vector.broadcast %37 : vector<2x1xf32> to vector<2x8xf32>
    %39 = arith.divf %35, %38 : vector<2x8xf32>
    %c0_28 = arith.constant 0 : index
    %c0_29 = arith.constant 0 : index
    %40 = vector.load %arg5[%c0_28, %c0_29] : memref<2x8xf32, #tpu.memory_space<vmem>>, vector<2x8xf32>
    %41 = arith.mulf %39, %40 : vector<2x8xf32>
    %cst_30 = arith.constant dense<0.000000e+00> : vector<2xf32>
    %42 = vector.multi_reduction <add>, %41, %cst_30 [1] : vector<2x8xf32> to vector<2xf32>
    %43 = vector.shape_cast %42 : vector<2xf32> to vector<2x1xf32>
    %cst_31 = arith.constant 9.99999974E-6 : f32
    %44 = vector.broadcast %cst_31 : f32 to vector<2x1xf32>
    %45 = arith.addf %43, %44 : vector<2x1xf32>
    %46 = vector.broadcast %45 : vector<2x1xf32> to vector<2x8xf32>
    %47 = arith.divf %41, %46 : vector<2x8xf32>
    %c0_32 = arith.constant 0 : index
    %c0_33 = arith.constant 0 : index
    %48 = vector.load %arg12[%c0_32, %c0_33] : memref<2x8xf32, #tpu.memory_space<vmem>>, vector<2x8xf32>
    tpu.vector_store %arg12[%c0_32, %c0_33], %47 {strides = array<i32>} : memref<2x8xf32, #tpu.memory_space<vmem>>, vector<2x8xf32>,
    %49 = vector.shape_cast %47 : vector<2x8xf32> to vector<2x8x1xf32>
    %50 = vector.broadcast %49 : vector<2x8x1xf32> to vector<2x8x16xf32>
    %51 = arith.mulf %50, %0 : vector<2x8x16xf32>
    %cst_34 = arith.constant dense<0.000000e+00> : vector<2x16xf32>
    %52 = vector.multi_reduction <add>, %51, %cst_34 [1] : vector<2x8x16xf32> to vector<2x16xf32>
    %c0_35 = arith.constant 0 : index
    %c0_36 = arith.constant 0 : index
    %53 = vector.load %arg13[%c0_35, %c0_36] : memref<2x16xf32, #tpu.memory_space<vmem>>, vector<2x16xf32>
    tpu.vector_store %arg13[%c0_35, %c0_36], %52 {strides = array<i32>} : memref<2x16xf32, #tpu.memory_space<vmem>>, vector<2x16xf32>,
    return
  }
  func.func @transform_0(%arg0: i32) -> (i32, i32, i32) {
    %c0_i32 = arith.constant 0 : i32
    %c0_i32_0 = arith.constant 0 : i32
    %c0_i32_1 = arith.constant 0 : i32
    return %arg0, %c0_i32, %c0_i32_0 : i32, i32, i32
  }
  func.func @transform_1(%arg0: i32) -> (i32, i32, i32) {
    %c0_i32 = arith.constant 0 : i32
    %c0_i32_0 = arith.constant 0 : i32
    %c0_i32_1 = arith.constant 0 : i32
    return %arg0, %c0_i32, %c0_i32_0 : i32, i32, i32
  }
  func.func @transform_2(%arg0: i32) -> (i32, i32, i32) {
    %c0_i32 = arith.constant 0 : i32
    %c0_i32_0 = arith.constant 0 : i32
    %c0_i32_1 = arith.constant 0 : i32
    return %arg0, %c0_i32, %c0_i32_0 : i32, i32, i32
  }
  func.func @transform_3(%arg0: i32) -> (i32, i32) {
    %c0_i32 = arith.constant 0 : i32
    %c0_i32_0 = arith.constant 0 : i32
    return %arg0, %c0_i32 : i32, i32
  }
  func.func @transform_4(%arg0: i32) -> (i32, i32) {
    %c0_i32 = arith.constant 0 : i32
    %c0_i32_0 = arith.constant 0 : i32
    return %arg0, %c0_i32 : i32, i32
  }
  func.func @transform_5(%arg0: i32) -> (i32, i32) {
    %c0_i32 = arith.constant 0 : i32
    %c0_i32_0 = arith.constant 0 : i32
    %c0_i32_1 = arith.constant 0 : i32
    return %c0_i32, %c0_i32_0 : i32, i32
  }
  func.func @transform_6(%arg0: i32) -> (i32, i32) {
    %c0_i32 = arith.constant 0 : i32
    %c0_i32_0 = arith.constant 0 : i32
    %c0_i32_1 = arith.constant 0 : i32
    return %c0_i32, %c0_i32_0 : i32, i32
  }
  func.func @transform_7(%arg0: i32) -> (i32, i32) {
    %c0_i32 = arith.constant 0 : i32
    %c0_i32_0 = arith.constant 0 : i32
    %c0_i32_1 = arith.constant 0 : i32
    return %c0_i32, %c0_i32_0 : i32, i32
  }
  func.func @transform_8(%arg0: i32) -> (i32, i32) {
    %c0_i32 = arith.constant 0 : i32
    %c0_i32_0 = arith.constant 0 : i32
    %c0_i32_1 = arith.constant 0 : i32
    return %c0_i32, %c0_i32_0 : i32, i32
  }
  func.func @transform_9(%arg0: i32) -> (i32, i32) {
    %c0_i32 = arith.constant 0 : i32
    %c0_i32_0 = arith.constant 0 : i32
    %c0_i32_1 = arith.constant 0 : i32
    return %c0_i32, %c0_i32_0 : i32, i32
  }
  func.func @transform_10(%arg0: i32) -> (i32, i32) {
    %c0_i32 = arith.constant 0 : i32
    %c0_i32_0 = arith.constant 0 : i32
    %c0_i32_1 = arith.constant 0 : i32
    return %c0_i32, %c0_i32_0 : i32, i32
  }
  func.func @transform_11(%arg0: i32) -> (i32, i32) {
    %c0_i32 = arith.constant 0 : i32
    %c0_i32_0 = arith.constant 0 : i32
    return %arg0, %c0_i32 : i32, i32
  }
  func.func @transform_12(%arg0: i32) -> (i32, i32) {
    %c0_i32 = arith.constant 0 : i32
    %c0_i32_0 = arith.constant 0 : i32
    return %arg0, %c0_i32 : i32, i32
  }
}

</mosaic_0001>

<bundles_post_ra>
// kernel: tpu_custom_call.1
= control target key start
LH: loop header
LB: loop body
LE: loop exit
PB: predicated region body
PF: predicated region fallthrough
CT: control target
= control target key end

     0   :  { %18 = vsyncpa [#allocation3], 0  ;;  %s1330_s0 = inlined_call_operand.hbm [shape: f32[2,8,16], index: 0, kind: input, shape index: {}]   ;;  %s1331_s1 = inlined_call_operand.hbm [shape: f32[2,8,16], index: 1, kind: input, shape index: {}]   ;;  %s1332_s2 = inlined_call_operand.hbm [shape: f32[2,8,16], index: 2, kind: input, shape index: {}]   ;;  %s1333_s3 = inlined_call_operand.vmem [shape: f32[2,16], index: 3, kind: input, shape index: {}]   ;;  %s1334_s4 = inlined_call_operand.hbm [shape: f32[2,8], index: 4, kind: input, shape index: {}]   ;;  %s1335_s5 = inlined_call_operand.vmem [shape: f32[16,32], index: 5, kind: input, shape index: {}]   ;;  %s1336_s6 = inlined_call_operand.hbm [shape: f32[16,32], index: 6, kind: input, shape index: {}]   ;;  %s1337_s7 = inlined_call_operand.hbm [shape: f32[16,32], index: 7, kind: input, shape index: {}]   ;;  %s1338_s8 = inlined_call_operand.hbm [shape: f32[16,32], index: 8, kind: input, shape index: {}]   ;;  %s1339_s9 = inlined_call_operand.vmem [shape: f32[1,32], index: 9, kind: input, shape index: {}]   ;;  %s1340_s10 = inlined_call_operand.vmem [shape: f32[1,32], index: 10, kind: input, shape index: {}]   ;;  %s1341_s11 = inlined_call_operand.hbm [shape: f32[2,8], index: 11, kind: output, shape index: {0}]   ;;  %s1342_s12 = inlined_call_operand.hbm [shape: f32[2,16], index: 12, kind: output, shape index: {1}]  }
   0x1   :  { %19 = vsyncpa [#allocation6], 0 }
   0x2   :  { %20 = vsyncpa [#allocation9], 0 }
   0x3   :  { %21 = vsyncpa [#allocation12], 0 }
   0x4   :  { %22 = vsyncpa [#allocation4], 0 }
   0x5   :  { %23 = vsyncpa [#allocation16], 0  ;;  %s1050_s21 = smov [#allocation5]   ;;  %s1051_s23 = smov [#allocation8]  }
   0x6   :  { %s41_s22 = sshll.u32 %s1050_s21, 4  ;;  %s68_s24 = sshll.u32 %s1051_s23, 4  ;;  %s42_s22 = int_to_ptr.vmem [resolvable:$true] %s41_s22  ;;  %s69_s24 = int_to_ptr.vmem [resolvable:$true] %s68_s24 }
   0x7   :  { %s840_s27 = scalar_lea.hbm %s1331_s1, 256 }
   0x8   :  { %p841_p0 = scmp.ne.s32.totalorder %s1331_s1, %s840_s27  ;;  %p844_p1 = scmp.lt.u32.totalorder %s840_s27, %s1331_s1 }
   0xa   :  { %p846_p2 = pnand %p844_p1, %p841_p0 }
   0xc   :  { %849 = shalt.err (!%p846_p2)
}
   0xd   :  { %s850_s14 = scalar_lea.vmem %s42_s22, 256  ;;  %p855_p4 = scmp.lt.s32.totalorder %s42_s22, %s42_s22 }
   0xe   :  { %p851_p3 = scmp.ne.s32.totalorder %s42_s22, %s850_s14  ;;  %p856_p5 = scmp.lt.s32.totalorder %s850_s14, %s850_s14 }
  0x10   :  { %p857_p6 = por %p856_p5, %p855_p4 }
  0x12   :  { %p858_p7 = pnand %p857_p6, %p851_p3 }
  0x14   :  { %861 = shalt.err (!%p858_p7)
}
  0x15   :  { %s1052_s15 = smov 128   ;;  %s1053_s16 = smov 8  }
  0x16   :  { %47 = dma.hbm_to_vmem [thread:$0]  %s1331_s1, 256, %s42_s22, [#allocation6], %s1052_s15, %s1052_s15, %s1053_s16  }
  0x17   :  { %s862_s21 = scalar_lea.hbm %s1334_s4, 32 }
  0x18   :  { %p863_p8 = scmp.ne.s32.totalorder %s1334_s4, %s862_s21  ;;  %p866_p9 = scmp.lt.u32.totalorder %s862_s21, %s1334_s4 }
  0x1a   :  { %p868_p10 = pnand %p866_p9, %p863_p8 }
  0x1c   :  { %871 = shalt.err (!%p868_p10)
}
  0x1d   :  { %s872_s28 = scalar_lea.vmem %s69_s24, 32  ;;  %p877_p12 = scmp.lt.s32.totalorder %s69_s24, %s69_s24 }
  0x1e   :  { %p873_p11 = scmp.ne.s32.totalorder %s69_s24, %s872_s28  ;;  %p878_p13 = scmp.lt.s32.totalorder %s872_s28, %s872_s28 }
  0x20   :  { %p879_p0 = por %p878_p13, %p877_p12 }
  0x22   :  { %p880_p1 = pnand %p879_p0, %p873_p11 }
  0x24   :  { %883 = shalt.err (!%p880_p1)
}
  0x25   :  { %71 = dma.hbm_to_vmem [thread:$0]  %s1334_s4, 32, %s69_s24, [#allocation9]  }
  0x26   :  { %s1054_s29 = smov [#allocation11]   ;;  %s1055_s13 = smov [#allocation2]  }
  0x27   :  { %s91_s30 = sshll.u32 %s1054_s29, 4  ;;  %s29_s14 = sshll.u32 %s1055_s13, 4  ;;  %s92_s30 = int_to_ptr.vmem [resolvable:$true] %s91_s30  ;;  %s1158_s14 = int_to_ptr.vmem [resolvable:$true] %s29_s14 }
  0x28   :  { %s884_s19 = scalar_lea.hbm %s1337_s7, 256 }
  0x29   :  { %p885_p2 = scmp.ne.s32.totalorder %s1337_s7, %s884_s19  ;;  %p888_p3 = scmp.lt.u32.totalorder %s884_s19, %s1337_s7 }
  0x2b   :  { %p890_p4 = pnand %p888_p3, %p885_p2 }
  0x2d   :  { %893 = shalt.err (!%p890_p4)
}
  0x2e   :  { %s894_s4 = scalar_lea.vmem %s92_s30, 256  ;;  %p899_p6 = scmp.lt.s32.totalorder %s92_s30, %s92_s30 }
  0x2f   :  { %p895_p5 = scmp.ne.s32.totalorder %s92_s30, %s894_s4  ;;  %p900_p7 = scmp.lt.s32.totalorder %s894_s4, %s894_s4 }
  0x31   :  { %p901_p8 = por %p900_p7, %p899_p6 }
  0x33   :  { %p902_p9 = pnand %p901_p8, %p895_p5 }
  0x35   :  { %905 = shalt.err (!%p902_p9)
}
  0x36   :  { %97 = dma.hbm_to_vmem [thread:$0]  %s1337_s7, 256, %s92_s30, [#allocation12], %s1052_s15, %s1052_s15, %s1053_s16  }
  0x37   :  { %s906_s1 = scalar_lea.hbm %s1330_s0, 256 }
  0x38   :  { %p907_p10 = scmp.ne.s32.totalorder %s1330_s0, %s906_s1  ;;  %p910_p11 = scmp.lt.u32.totalorder %s906_s1, %s1330_s0 }
  0x3a   :  { %p912_p12 = pnand %p910_p11, %p907_p10 }
  0x3c   :  { %915 = shalt.err (!%p912_p12)
}
  0x3d   :  { %s916_s18 = scalar_lea.vmem %s1158_s14, 256  ;;  %p921_p0 = scmp.lt.s32.totalorder %s1158_s14, %s1158_s14 }
  0x3e   :  { %p917_p13 = scmp.ne.s32.totalorder %s1158_s14, %s916_s18  ;;  %p922_p1 = scmp.lt.s32.totalorder %s916_s18, %s916_s18 }
  0x40   :  { %p923_p2 = por %p922_p1, %p921_p0 }
  0x42   :  { %p924_p3 = pnand %p923_p2, %p917_p13 }
  0x44   :  { %927 = shalt.err (!%p924_p3)
}
  0x45   :  { %35 = dma.hbm_to_vmem [thread:$0]  %s1330_s0, 256, %s1158_s14, [#allocation3], %s1052_s15, %s1052_s15, %s1053_s16  }
  0x46   :  { %s1056_s19 = smov [#allocation7]   ;;  %s1057_s21 = smov [#allocation10]  }
  0x47   :  { %s53_s20 = sshll.u32 %s1056_s19, 4  ;;  %s79_s23 = sshll.u32 %s1057_s21, 4  ;;  %s54_s20 = int_to_ptr.vmem [resolvable:$true] %s53_s20  ;;  %s1195_s23 = int_to_ptr.vmem [resolvable:$true] %s79_s23 }
  0x48   :  { %s928_s24 = scalar_lea.hbm %s1332_s2, 256 }
  0x49   :  { %p929_p4 = scmp.ne.s32.totalorder %s1332_s2, %s928_s24  ;;  %p932_p5 = scmp.lt.u32.totalorder %s928_s24, %s1332_s2 }
  0x4b   :  { %p934_p6 = pnand %p932_p5, %p929_p4 }
  0x4d   :  { %937 = shalt.err (!%p934_p6)
}
  0x4e   :  { %s938_s0 = scalar_lea.vmem %s54_s20, 256  ;;  %p943_p8 = scmp.lt.s32.totalorder %s54_s20, %s54_s20 }
  0x4f   :  { %p939_p7 = scmp.ne.s32.totalorder %s54_s20, %s938_s0  ;;  %p944_p9 = scmp.lt.s32.totalorder %s938_s0, %s938_s0 }
  0x51   :  { %p945_p10 = por %p944_p9, %p943_p8 }
  0x53   :  { %p946_p11 = pnand %p945_p10, %p939_p7 }
  0x55   :  { %949 = shalt.err (!%p946_p11)
}
  0x56   :  { %59 = dma.hbm_to_vmem [thread:$0]  %s1332_s2, 256, %s54_s20, [#allocation6], %s1052_s15, %s1052_s15, %s1053_s16  }
  0x57   :  { %s950_s17 = scalar_lea.hbm %s1336_s6, 256 }
  0x58   :  { %p951_p12 = scmp.ne.s32.totalorder %s1336_s6, %s950_s17  ;;  %p954_p13 = scmp.lt.u32.totalorder %s950_s17, %s1336_s6 }
  0x5a   :  { %p956_p0 = pnand %p954_p13, %p951_p12 }
  0x5c   :  { %959 = shalt.err (!%p956_p0)
}
  0x5d   :  { %s960_s21 = scalar_lea.vmem %s1195_s23, 256  ;;  %p965_p2 = scmp.lt.s32.totalorder %s1195_s23, %s1195_s23 }
  0x5e   :  { %p961_p1 = scmp.ne.s32.totalorder %s1195_s23, %s960_s21  ;;  %p966_p3 = scmp.lt.s32.totalorder %s960_s21, %s960_s21 }
  0x60   :  { %p967_p4 = por %p966_p3, %p965_p2 }
  0x62   :  { %p968_p5 = pnand %p967_p4, %p961_p1 }
  0x64   :  { %971 = shalt.err (!%p968_p5)
}
  0x65   :  { %85 = dma.hbm_to_vmem [thread:$0]  %s1336_s6, 256, %s1195_s23, [#allocation9], %s1052_s15, %s1052_s15, %s1053_s16  }
  0x66   :  { %s1058_s25 = smov [#allocation13]   ;;  %s972_s27 = scalar_lea.hbm %s1338_s8, 256 }
  0x67   :  { %s103_s4 = sshll.u32 %s1058_s25, 4  ;;  %p973_p6 = scmp.ne.s32.totalorder %s1338_s8, %s972_s27  ;;  %s104_s4 = int_to_ptr.vmem [resolvable:$true] %s103_s4 }
  0x68   :  { %p976_p7 = scmp.lt.u32.totalorder %s972_s27, %s1338_s8 }
  0x6a   :  { %p978_p8 = pnand %p976_p7, %p973_p6 }
  0x6c   :  { %981 = shalt.err (!%p978_p8)
}
  0x6d   :  { %s982_s22 = scalar_lea.vmem %s104_s4, 256  ;;  %p987_p10 = scmp.lt.s32.totalorder %s104_s4, %s104_s4 }
  0x6e   :  { %p983_p9 = scmp.ne.s32.totalorder %s104_s4, %s982_s22  ;;  %p988_p11 = scmp.lt.s32.totalorder %s982_s22, %s982_s22 }
  0x70   :  { %p989_p12 = por %p988_p11, %p987_p10 }
  0x72   :  { %p990_p13 = pnand %p989_p12, %p983_p9 }
  0x74   :  { %993 = shalt.err (!%p990_p13)
}
  0x75   :  { %109 = dma.hbm_to_vmem [thread:$0]  %s1338_s8, 256, %s104_s4, [#allocation12], %s1052_s15, %s1052_s15, %s1053_s16  }
  0x76   :  { %1038 = dma.done.wait [#allocation3], 256  }
  0x77   :  { %1039 = vsyncadd [#allocation3], 4294967040 }
  0x78   :  { %1040 = dma.done.wait [#allocation6], 512  }
  0x79   :  { %1041 = vsyncadd [#allocation6], 4294966784 }
  0x7a   :  { %1042 = dma.done.wait [#allocation9], 288  }
  0x7b   :  { %1043 = vsyncadd [#allocation9], 4294967008 }
  0x7c   :  { %1044 = dma.done.wait [#allocation12], 512  }
  0x7d   :  { %1045 = vsyncadd [#allocation12], 4294966784  ;;  %vm145_vm0 = vcmask 130048   ;;  %v143_v0 = vld [vmem:[#allocation10] sm:$0xff]  ;;  %v144_v1 = vld [vmem:[#allocation10 + $0x8] sm:$0xff]  ;;  %v1059_v16 = vmov 0.0|0.0   ;;  %v473_v23 = vlaneseq }
  0x7e   :  { %v141_v2 = vld [vmem:[%s1335_s5] sm:$0xff]  ;;  %v787_v3 = vpack.c.bf16 %v144_v1, %v143_v0  ;;  %v142_v4 = vld [vmem:[%s1335_s5 + $0x8] sm:$0xff]  ;;  %v137_v5 = vld [vmem:[#allocation5] sm:$0xff]  ;;  %vm1060_vm1 = vmmov 0   ;;  %v1061_v19 = vmov 0.0   ;;  %vm524_vm2 = vcmask 261120  }
  0x7f   :  { %v1253_v6 = vld [vmem:[#allocation2] sm:$0xff]  ;;  %v791_v7 = vpack.c.bf16 %v142_v4, %v141_v2  ;;  %763 = vmatprep.mubr.msk.f32.mxu1 %vm145_vm0, %v137_v5  ;;  %v309_v9 = vld [vmem:[#allocation11 + $0x8] sm:$0xff]  ;;  %v394_v10 = vld [vmem:[#allocation13] sm:$0xff]  ;;  %v1062_v21 = vmov 1966171168   ;;  %v474_v25 = vshrl.u32 %v473_v23, 7 }
  0x80   :  { %770 = vmatprep.mubr.msk.f32.mxu0 %vm145_vm0, %v1253_v6  ;;  %v308_v8 = vld [vmem:[#allocation11] sm:$0xff]  ;;  %788 = vmatprep.subr.bf16.mxu1 %v787_v3  ;;  %v395_v11 = vld [vmem:[#allocation13 + $0x8] sm:$0xff]  ;;  %v471_v22 = vunpack.c.l.s4 %v1062_v21  ;;  %v534_v54 = vand.u32 127, %v473_v23  ;;  %vm543_vm3 = vcmask 1041409   ;;  %vm546_vm4 = vcmask 58368  }
  0x81   :  { %792 = vmatprep.subr.bf16.mxu0 %v791_v7  ;;  %790 = vmatpush3.bf16.msra.mxu1 %v787_v3  ;;  %v138_v12 = vld [vmem:[#allocation5 + $0x8] sm:$0xff]  ;;  %v795_v13 = vpack.c.bf16 %v309_v9, %v308_v8  ;;  %v800_v14 = vpack.c.bf16 %v395_v11, %v394_v10  ;;  %v1258_v15 = vld [vmem:[#allocation2 + $0x8] sm:$0xff]  ;;  %v139_v17 = vld [vmem:[#allocation7] sm:$0xff]  ;;  %v1269_v31 = vsub.s32 0, %v474_v25  ;;  %v1063_v62 = vmov 0  }
  0x82   :  { %794 = vmatpush3.bf16.msra.mxu0 %v791_v7  ;;  %799 = vmatprep.subr.bf16.mxu1 %v1059_v16  ;;  %v393_v18 = vld [vmem:[%s1333_s3] sm:$0x3]  ;;  %v140_v20 = vld [vmem:[#allocation7 + $0x8] sm:$0xff]  ;;  %v472_v24 = vunpack.c.0.s8 %v471_v22  ;;  %v1279_v56 = vsub.s32 %v534_v54, %v474_v25  ;;  %v557_v63 = vsub.s32 1, %v474_v25  ;;  %v603_v10 = vld [vmem:[#allocation8] sm:$0x3] }
  0x83   :  { %796 = vmatprep.subr.bf16.mxu0 %v795_v13  ;;  %v742_v42 = vld [vmem:[%s1339_s9] ss:$0 sm:$0xff]  ;;  %823 = vset.pattern.permute.xlu0 %v1063_v62  ;;  %v608_v11 = vrot.slane %v603_v10, %v1269_v31  ;;  %s1064_s9 = smov [#allocation14]  }
  0x84   :  { %764 = vmatmul.mubr.msk.f32.vlgmr.msra.gmra.mrb[0].mxu1 %vm145_vm0, %v138_v12  ;;  %v475_v28 = vsub.s32 %v472_v24, %v474_v25  ;;  %v743_v47 = vld [vmem:[%s1340_s10] ss:$0 sm:$0xff]  ;;  %822 = vset.pattern.permute.xlu1 %v1063_v62  ;;  %v615_v12 = vrot.slane %v603_v10, %v557_v63  ;;  %s709_s10 = sshll.u32 %s1064_s9, 4  ;;  %s710_s10 = int_to_ptr.vmem [resolvable:$true] %s709_s10 }
  0x85   :  { %771 = vmatmul.mubr.msk.f32.vlgmr.msra.gmra.mrb[0].mxu0 %vm145_vm0, %v1258_v15  ;;  %801 = vmatpush3.bf16.msra.mxu1 %v800_v14  ;;  %s994_s30 = scalar_lea.vmem %s710_s10, 32  ;;  %p999_p1 = scmp.lt.s32.totalorder %s710_s10, %s710_s10 }
  0x86   :  { %798 = vmatpush3.bf16.msra.mxu0 %v795_v13  ;;  %784 = vmatprep.mubr.msk.f32.mxu1 %vm1060_vm1, %v1061_v19  ;;  %p995_p0 = scmp.ne.s32.totalorder %s710_s10, %s994_s30  ;;  %p1000_p2 = scmp.lt.s32.totalorder %s994_s30, %s994_s30 }
  0x87   :  { %777 = vmatprep.mubr.msk.f32.mxu0 %vm145_vm0, %v139_v17 }
  0x88   :  { %785 = vmatmul.mubr.msk.f32.vlgmr.msra.gmra.mrb[2].mxu1 %vm145_vm0, %v393_v18  ;;  %p1001_p3 = por %p1000_p2, %p999_p1 }
  0x8a   :  { %p1002_p4 = pnand %p1001_p3, %p995_p0 }
  0x8d   :  { %778 = vmatmul.mubr.msk.f32.vlgmr.msra.gmra.mrb[0].mxu0 %vm145_vm0, %v140_v20 }
 0x157   :  { %v765_v26 = vpop.f32.mrb[0].mxu1 }
 0x158   :  { %v218_v27 = vpop.f32.mrb[1].mxu1 }
 0x15b   :  { %v465_v29 = vpop.f32.mrb[2].mxu1 }
 0x15c   :  { %v476_v30 = vrot.slane %v465_v29, %v475_v28  ;;  %v786_v32 = vpop.f32.mrb[3].mxu1 }
 0x15e   :  { %v477_v33 = vcombine.high %v476_v30, %v476_v30  ;;  %v484_v34 = vrot.slane %v476_v30, %v475_v28 }
 0x160   :  { %v491_v35 = vrot.slane %v477_v33, %v475_v28  ;;  %v779_v36 = vpop.f32.mrb[0].mxu0  ;;  %v495_v37 = vrot.slane %v484_v34, %v1269_v31 }
 0x161   :  { %v802_v38 = vadd.f32 %v779_v36, %v765_v26  ;;  %v382_v39 = vpop.f32.mrb[1].mxu0 }
 0x162   :  { %v499_v40 = vrot.slane %v491_v35, %v1269_v31  ;;  %v803_v41 = vadd.f32 %v382_v39, %v218_v27 }
 0x164   :  { %v503_v43 = vadd.f32 %v802_v38, %v499_v40  ;;  %v502_v44 = vadd.f32 %v803_v41, %v495_v37 }
 0x166   :  { %v512_v45 = vadd.f32 %v742_v42, %v503_v43  ;;  %v511_v46 = vadd.f32 %v742_v42, %v502_v44 }
 0x168   :  { %824 = vtanh.f32 %v512_v45 }
 0x169   :  { %826 = vtanh.f32 %v511_v46 }
 0x172   :  { %v825_v48 = vpop.eup %824 }
 0x173   :  { %v827_v49 = vpop.eup %826  ;;  %v523_v52 = vmul.f32 %v825_v48, %v743_v47 }
 0x174   :  { %v522_v50 = vmul.f32 %v827_v49, %v743_v47 }
 0x175   :  { %v528_v53 = vsel %vm524_vm2, %v523_v52, 0.0 }
 0x176   :  { %v525_v51 = vsel %vm524_vm2, %v522_v50, 0.0 }
 0x177   :  { %526 = vadd.xlane.f32.xlu0 %v525_v51 }
 0x17b   :  { %529 = vadd.xlane.f32.xlu0 %v528_v53 }
 0x204   :  { %v527_v55 = vpop.xlane.xlu0 %526 }
 0x205   :  { %v538_v58 = vrot.slane %v527_v55, %v1279_v56 }
 0x208   :  { %v530_v57 = vpop.xlane.xlu0 %529 }
 0x209   :  { %v542_v59 = vrot.slane %v530_v57, %v1279_v56 }
 0x20b   :  { %v544_v60 = vsel %vm543_vm3, %v542_v59, %v538_v58 }
 0x20c   :  { %v547_v61 = vsel %vm546_vm4, %v544_v60, -inf }
 0x20d   :  { %548 = vmax.xlane.f32.xlu1 %v547_v61 }
 0x29a   :  { %v549_v0 = vpop.xlane.xlu1 %548 }
 0x29b   :  { %v554_v1 = vrot.slane %v549_v0, %v1269_v31  ;;  %v558_v2 = vrot.slane %v549_v0, %v557_v63 }
 0x29d   :  { %v561_v3 = vsub.f32 %v527_v55, %v554_v1  ;;  %v562_v4 = vsub.f32 %v530_v57, %v558_v2 }
 0x29f   :  { %v563_v5 = vmul.f32 1.442695, %v561_v3  ;;  %v565_v7 = vmul.f32 1.442695, %v562_v4 }
 0x2a1   :  { %828 = vpow2.f32 %v563_v5 }
 0x2a2   :  { %830 = vpow2.f32 %v565_v7 }
 0x2ab   :  { %v829_v8 = vpop.eup %828 }
 0x2ac   :  { %v831_v9 = vpop.eup %830  ;;  %570 = vperm.xlu1 %822, %v829_v8  }
 0x2ad   :  { %573 = vperm.xlu0 %823, %v831_v9  }
 0x2b1   :  { %610 = vbcast.lane.b32.xlu0 %v608_v11, 256 }
 0x2b5   :  { %617 = vbcast.lane.b32.xlu0 %v615_v12, 256 }
 0x32b   :  { %v571_v13 = vpop.permute.xlu1 %570 }
 0x32c   :  { %v574_v14 = vpop.permute.xlu0 %573  ;;  %v578_v16 = vrot.slane %v571_v13, %v1279_v56 }
 0x32d   :  { %v582_v17 = vrot.slane %v574_v14, %v1279_v56 }
 0x32f   :  { %v583_v18 = vsel %vm543_vm3, %v582_v17, %v578_v16 }
 0x330   :  { %v585_v19 = vsel %vm546_vm4, %v583_v18, 0.0  ;;  %v611_v23 = vpop.permute.xlu0 %610 }
 0x331   :  { %586 = vadd.xlane.f32.xlu1 %v585_v19 }
 0x334   :  { %v618_v27 = vpop.permute.xlu0 %617 }
 0x3be   :  { %v587_v20 = vpop.xlane.xlu1 %586 }
 0x3bf   :  { %v592_v21 = vrot.slane %v587_v20, %v1269_v31  ;;  %v596_v22 = vrot.slane %v587_v20, %v557_v63 }
 0x3c1   :  { %832 = vrcp.f32 %v592_v21 }
 0x3c2   :  { %834 = vrcp.f32 %v596_v22 }
 0x3cb   :  { %v833_v24 = vpop.eup %832 }
 0x3cc   :  { %v835_v25 = vpop.eup %834  ;;  %v600_v26 = vmul.f32 %v833_v24, %v829_v8 }
 0x3cd   :  { %v602_v28 = vmul.f32 %v835_v25, %v831_v9 }
 0x3ce   :  { %v621_v29 = vmul.f32 %v611_v23, %v600_v26 }
 0x3cf   :  { %v622_v30 = vmul.f32 %v618_v27, %v602_v28 }
 0x3d0   :  { %626 = vperm.xlu1 %822, %v621_v29  }
 0x3d1   :  { %629 = vperm.xlu0 %823, %v622_v30  }
 0x44f   :  { %v627_v32 = vpop.permute.xlu1 %626 }
 0x450   :  { %v630_v33 = vpop.permute.xlu0 %629  ;;  %v634_v34 = vrot.slane %v627_v32, %v1279_v56 }
 0x451   :  { %v638_v35 = vrot.slane %v630_v33, %v1279_v56 }
 0x453   :  { %v639_v36 = vsel %vm543_vm3, %v638_v35, %v634_v34 }
 0x454   :  { %v641_v37 = vsel %vm546_vm4, %v639_v36, 0.0 }
 0x455   :  { %642 = vadd.xlane.f32.xlu0 %v641_v37 }
 0x4e2   :  { %v643_v38 = vpop.xlane.xlu0 %642 }
 0x4e3   :  { %v644_v39 = vadd.f32 1e-05, %v643_v38 }
 0x4e5   :  { %v649_v40 = vrot.slane %v644_v39, %v1269_v31  ;;  %v653_v41 = vrot.slane %v644_v39, %v557_v63 }
 0x4e7   :  { %836 = vrcp.f32 %v649_v40 }
 0x4e8   :  { %838 = vrcp.f32 %v653_v41 }
 0x4f1   :  { %v837_v42 = vpop.eup %836 }
 0x4f2   :  { %v657_v43 = vmul.f32 %v837_v42, %v621_v29  ;;  %v839_v44 = vpop.eup %838 }
 0x4f3   :  { %v659_v45 = vmul.f32 %v839_v44, %v622_v30 }
 0x4f4   :  { %663 = vperm.xlu1 %822, %v657_v43  }
 0x4f8   :  { %666 = vperm.xlu1 %822, %v659_v45  }
 0x573   :  { %v664_v46 = vpop.permute.xlu1 %663 }
 0x574   :  { %v681_v47 = vmul.f32 %v664_v46, %v1253_v6  ;;  %v671_v31 = vrot.slane %v664_v46, %v1279_v56 }
 0x576   :  { %v683_v48 = vsel %vm145_vm0, %v681_v47, 0.0 }
 0x577   :  { %v684_v49 = vrot.slane %v683_v48, 4  ;;  %v667_v50 = vpop.permute.xlu1 %666 }
 0x578   :  { %v675_v51 = vrot.slane %v667_v50, %v1279_v56  ;;  %v682_v52 = vmul.f32 %v667_v50, %v1258_v15 }
 0x579   :  { %v685_v53 = vadd.f32 %v684_v49, %v683_v48 }
 0x57a   :  { %v690_v54 = vsel %vm145_vm0, %v682_v52, 0.0  ;;  %v676_v55 = vsel %vm543_vm3, %v675_v51, %v671_v31 }
 0x57b   :  { %v686_v57 = vrot.slane %v685_v53, 2  ;;  %v691_v6 = vrot.slane %v690_v54, 4  ;;  %678 = vst.msk [vmem:[#allocation14] sm:$0x3] %vm546_vm4, %v676_v55 }
 0x57c   :  { %1005 = shalt.err (!%p1002_p4)
}
 0x57d   :  { %s1006_s2 = scalar_lea.hbm %s1341_s11, 32 }
 0x57e   :  { %p1007_p5 = scmp.ne.s32.totalorder %s1341_s11, %s1006_s2  ;;  %p1010_p6 = scmp.lt.u32.totalorder %s1006_s2, %s1341_s11 }
 0x580   :  { %p1012_p7 = pnand %p1010_p6, %p1007_p5 }
 0x582   :  { %1015 = shalt.err (!%p1012_p7)
}
 0x583   :  { %712 = dma.vmem_to_hbm [thread:$0]  %s710_s10, 32, %s1341_s11, [#allocation4]   ;;  %v687_v15 = vadd.f32 %v686_v57, %v685_v53  ;;  %v692_v56 = vadd.f32 %v691_v6, %v690_v54  ;;  %vm701_vm5 = vcmask 123904  }
 0x584   :  { %s1065_s28 = smov [#allocation15]  }
 0x585   :  { %v693_v58 = vrot.slane %v692_v56, 2  ;;  %v688_v59 = vrot.slane %v687_v15, 1  ;;  %s719_s1 = sshll.u32 %s1065_s28, 4  ;;  %s720_s1 = int_to_ptr.vmem [resolvable:$true] %s719_s1 }
 0x586   :  { %s1016_s0 = scalar_lea.vmem %s720_s1, 32  ;;  %p1021_p9 = scmp.lt.s32.totalorder %s720_s1, %s720_s1 }
 0x587   :  { %v694_v60 = vadd.f32 %v693_v58, %v692_v56  ;;  %v689_v63 = vadd.f32 %v688_v59, %v687_v15  ;;  %p1017_p8 = scmp.ne.s32.totalorder %s720_s1, %s1016_s0  ;;  %p1022_p10 = scmp.lt.s32.totalorder %s1016_s0, %s1016_s0 }
 0x589   :  { %v695_v61 = vrot.slane %v694_v60, 1  ;;  %p1023_p11 = por %p1022_p10, %p1021_p9 }
 0x58b   :  { %v696_v62 = vadd.f32 %v695_v61, %v694_v60  ;;  %p1024_p12 = pnand %p1023_p11, %p1017_p8 }
 0x58d   :  { %v699_v0 = vsel %vm543_vm3, %v696_v62, %v689_v63 }
 0x58e   :  { %702 = vst.msk [vmem:[#allocation15] sm:$0x3] %vm701_vm5, %v699_v0 }
 0x58f   :  { %1027 = shalt.err (!%p1024_p12)
}
 0x590   :  { %s1028_s22 = scalar_lea.hbm %s1342_s12, 32 }
 0x591   :  { %p1029_p13 = scmp.ne.s32.totalorder %s1342_s12, %s1028_s22  ;;  %p1032_p0 = scmp.lt.u32.totalorder %s1028_s22, %s1342_s12 }
 0x593   :  { %p1034_p1 = pnand %p1032_p0, %p1029_p13 }
 0x595   :  { %1037 = shalt.err (!%p1034_p1)
}
 0x596   :  { %722 = dma.vmem_to_hbm [thread:$0]  %s720_s1, 32, %s1342_s12, [#allocation16]  }
 0x597   :  { %1046 = dma.done.wait [#allocation4], 32  }
 0x598   :  { %1047 = vsyncadd [#allocation4], 4294967264 }
 0x599   :  { %1048 = dma.done.wait [#allocation16], 32  }
 0x59a   :  { %1049 = vsyncadd [#allocation16], 4294967264 }
 0x59b   :  { %729 = vsyncpa [#allocation3], 1 }
 0x59c   :  { %730 = vsyncpa [#allocation6], 1 }
 0x59d   :  { %731 = vsyncpa [#allocation9], 1 }
 0x59e   :  { %732 = vsyncpa [#allocation12], 1 }
 0x59f   :  { %733 = vsyncpa [#allocation4], 1 }
 0x5a0   :  { %734 = vsyncpa [#allocation16], 1 }

</bundles_post_ra>
